<compile_context>
chip_gen: v7x
topology: tpu7x:2x2x1
jax: 0.10.0
libtpu: 0.0.40
codegen_flags: <defaults>
</compile_context>

<pallas_src>
import jax
import jax.numpy as jnp
from jax.experimental import pallas as pl
from jax.experimental.pallas import tpu as pltpu

# Small, module-consistent shapes.
B, S, D, H = 2, 8, 32, 4          # batch, seq, n_units, n_heads
DK = D // H
NEG_INF = 1e9


def mha_kernel(qkv_ref, maskb_ref, w_ref, b_ref, o_ref):
    # qkv_ref : (1, 3, S, D) bf16  -- stacked [query, key, value] for this batch element
    # maskb_ref: (1, S, S)   f32   -- additive mask bias (0 = attend, -1e9 = masked)
    # w_ref   : (4, D, D)    bf16  -- [Wq/sqrt(DK), Wk, Wv, Wo]
    # b_ref   : (4, D)       f32   -- [bq/sqrt(DK), bk, bv, bo]
    qkv = qkv_ref[0]                         # (3, S, D) bf16
    maskb = maskb_ref[0]                     # (S, S) f32
    w = w_ref[...]                           # (4, D, D) bf16
    b = b_ref[...]                           # (4, D) f32

    # ---- fused q/k/v projection (scale already folded into w[0], b[0]) ----
    proj = jnp.einsum("tsd,tde->tse", qkv, w[0:3],
                      preferred_element_type=jnp.float32)      # (3, S, D) f32
    proj = proj + b[0:3].reshape(3, 1, D)

    # ---- split heads: (S, D) -> (H, S, DK) per projection ----
    qh = jnp.swapaxes(proj[0].reshape(S, H, DK), 0, 1)          # (H, S, DK)
    kh = jnp.swapaxes(proj[1].reshape(S, H, DK), 0, 1)
    vh = jnp.swapaxes(proj[2].reshape(S, H, DK), 0, 1)

    # ---- scaled dot-product attention (all heads batched) ----
    scores = jnp.einsum("hqd,hkd->hqk",
                        qh.astype(jnp.bfloat16), kh.astype(jnp.bfloat16),
                        preferred_element_type=jnp.float32)     # (H, S, S)
    scores = scores + maskb[None, :, :]

    m = jnp.max(scores, axis=-1, keepdims=True)
    e = jnp.exp(scores - m)
    ssum = jnp.sum(e, axis=-1, keepdims=True)
    p = e * pl.reciprocal(ssum, approx=True)                    # softmax over keys
    # TODO(synk): training-mode dropout on attention probs not implemented (eval => identity)

    ctx = jnp.einsum("hqk,hkd->hqd",
                     p.astype(jnp.bfloat16), vh.astype(jnp.bfloat16),
                     preferred_element_type=jnp.float32)        # (H, S, DK)
    ctx = jnp.swapaxes(ctx, 0, 1).reshape(S, D)                 # concat heads -> (S, D)

    # ---- output projection ----
    out = jnp.dot(ctx.astype(jnp.bfloat16), w[3],
                  preferred_element_type=jnp.float32) + b[3:4]
    o_ref[0] = out


def multi_head_attention(query, key, value, mask, params):
    """query/key/value: (B, S, D) f32; mask: (B, S, S) with 1 = attend, 0 = masked."""
    wq, bq, wk, bk, wv, bv, wo, bo = params
    scale = 1.0 / (DK ** 0.5)

    # Pack parameters: fold the 1/sqrt(DK) scale into the query projection.
    w_pack = jnp.stack([wq * scale, wk, wv, wo]).astype(jnp.bfloat16)   # (4, D, D)
    b_pack = jnp.stack([bq * scale, bk, bv, bo]).astype(jnp.float32)    # (4, D)

    # Stack q/k/v inputs -> one DMA per batch step; bf16 MXU operands.
    qkv = jnp.stack([query, key, value], axis=1).astype(jnp.bfloat16)   # (B, 3, S, D)
    # Additive mask bias: 0 where attend, -1e9 where masked.
    mask_bias = (mask.astype(jnp.float32) - 1.0) * NEG_INF              # (B, S, S)

    bsz = query.shape[0]
    return pl.pallas_call(
        mha_kernel,
        out_shape=jax.ShapeDtypeStruct((bsz, S, D), jnp.float32),
        grid=(bsz,),
        in_specs=[
            pl.BlockSpec((1, 3, S, D), lambda b: (b, 0, 0, 0)),   # stacked q/k/v
            pl.BlockSpec((1, S, S), lambda b: (b, 0, 0)),         # additive mask bias
            pl.BlockSpec((4, D, D), lambda b: (0, 0, 0)),         # packed weights
            pl.BlockSpec((4, D), lambda b: (0, 0)),               # packed biases
        ],
        out_specs=pl.BlockSpec((1, S, D), lambda b: (b, 0, 0)),
        compiler_params=pltpu.CompilerParams(dimension_semantics=("parallel",)),
    )(qkv, mask_bias, w_pack, b_pack)


def reference_mha(query, key, value, mask, params):
    """Plain-JAX f32 reference matching the PyTorch forward pass (eval mode)."""
    wq, bq, wk, bk, wv, bv, wo, bo = params
    bsz = query.shape[0]
    q = (query @ wq + bq).reshape(bsz, S, H, DK).transpose(0, 2, 1, 3)
    k = (key @ wk + bk).reshape(bsz, S, H, DK).transpose(0, 2, 1, 3)
    v = (value @ wv + bv).reshape(bsz, S, H, DK).transpose(0, 2, 1, 3)
    scores = jnp.einsum("bhqd,bhkd->bhqk", q, k) / jnp.sqrt(jnp.float32(DK))
    scores = jnp.where(mask[:, None, :, :] == 0, -NEG_INF, scores)
    p = jax.nn.softmax(scores, axis=-1)
    ctx = jnp.einsum("bhqk,bhkd->bhqd", p, v).transpose(0, 2, 1, 3).reshape(bsz, S, D)
    return ctx @ wo + bo


def make_params(key):
    keys = jax.random.split(key, 8)
    std = 0.1
    wq = std * jax.random.normal(keys[0], (D, D), jnp.float32)
    wk = std * jax.random.normal(keys[1], (D, D), jnp.float32)
    wv = std * jax.random.normal(keys[2], (D, D), jnp.float32)
    wo = std * jax.random.normal(keys[3], (D, D), jnp.float32)
    bq = 0.01 * jax.random.normal(keys[4], (D,), jnp.float32)
    bk = 0.01 * jax.random.normal(keys[5], (D,), jnp.float32)
    bv = 0.01 * jax.random.normal(keys[6], (D,), jnp.float32)
    bo = 0.01 * jax.random.normal(keys[7], (D,), jnp.float32)
    return (wq, bq, wk, bk, wv, bv, wo, bo)


if __name__ == "__main__":
    root = jax.random.PRNGKey(0)
    kq, kk, kv, kp = jax.random.split(root, 4)
    query = jax.random.normal(kq, (B, S, D), jnp.float32)
    key_in = jax.random.normal(kk, (B, S, D), jnp.float32)
    value = jax.random.normal(kv, (B, S, D), jnp.float32)
    # causal mask shared across batch: (B, S, S), 1 = attend
    mask = jnp.broadcast_to(jnp.tril(jnp.ones((S, S), jnp.float32)), (B, S, S))
    params = make_params(kp)

    out = multi_head_attention(query, key_in, value, mask, params)
    out = jax.block_until_ready(out)

    ref = reference_mha(query, key_in, value, mask, params)
    assert out.shape == (B, S, D)
    max_err = float(jnp.max(jnp.abs(out - ref)))
    assert max_err < 2e-2, f"mismatch vs reference: {max_err}"
    print("KERNEL_OK")
</pallas_src>

<mosaic_0001>
module attributes {stable_mosaic.version = 11 : i64} {
  func.func @mha_kernel(%arg0: i32, %arg1: memref<1x3x8x32xbf16, #tpu.memory_space<vmem>>, %arg2: memref<1x8x8xf32, #tpu.memory_space<vmem>>, %arg3: memref<4x32x32xbf16, #tpu.memory_space<vmem>>, %arg4: memref<4x32xf32, #tpu.memory_space<vmem>>, %arg5: memref<1x8x32xf32, #tpu.memory_space<vmem>>) attributes {dimension_semantics = [#tpu.dimension_semantics<parallel>], iteration_bounds = array<i64: 2>, scalar_prefetch = 0 : i64, scratch_operands = 0 : i64, tpu.core_type = #tpu.core_type<tc>, window_params = [{transform_indices = @transform_0, window_bounds = array<i64: 1, 3, 8, 32>}, {transform_indices = @transform_1, window_bounds = array<i64: 1, 8, 8>}, {pipeline_mode = #tpu.pipeline_mode<synchronous>, transform_indices = @transform_2, window_bounds = array<i64: 4, 32, 32>}, {pipeline_mode = #tpu.pipeline_mode<synchronous>, transform_indices = @transform_3, window_bounds = array<i64: 4, 32>}, {transform_indices = @transform_4, window_bounds = array<i64: 1, 8, 32>}]} {
    %c0 = arith.constant 0 : index
    %c0_0 = arith.constant 0 : index
    %c0_1 = arith.constant 0 : index
    %c0_2 = arith.constant 0 : index
    %0 = vector.load %arg1[%c0, %c0_0, %c0_1, %c0_2] : memref<1x3x8x32xbf16, #tpu.memory_space<vmem>>, vector<1x3x8x32xbf16>
    %1 = vector.shape_cast %0 : vector<1x3x8x32xbf16> to vector<3x8x32xbf16>
    %c0_3 = arith.constant 0 : index
    %c0_4 = arith.constant 0 : index
    %c0_5 = arith.constant 0 : index
    %2 = vector.load %arg2[%c0_3, %c0_4, %c0_5] : memref<1x8x8xf32, #tpu.memory_space<vmem>>, vector<1x8x8xf32>
    %3 = vector.shape_cast %2 : vector<1x8x8xf32> to vector<8x8xf32>
    %c0_6 = arith.constant 0 : index
    %c0_7 = arith.constant 0 : index
    %c0_8 = arith.constant 0 : index
    %4 = vector.load %arg3[%c0_6, %c0_7, %c0_8] : memref<4x32x32xbf16, #tpu.memory_space<vmem>>, vector<4x32x32xbf16>
    %c0_9 = arith.constant 0 : index
    %c0_10 = arith.constant 0 : index
    %5 = vector.load %arg4[%c0_9, %c0_10] : memref<4x32xf32, #tpu.memory_space<vmem>>, vector<4x32xf32>
    %6 = vector.extract_strided_slice %4 {offsets = [0, 0, 0], sizes = [3, 32, 32], strides = [1, 1, 1]} : vector<4x32x32xbf16> to vector<3x32x32xbf16>
    "tpu.trace_start"() <{level = 10 : i32, message = "tsd,tde->tse"}> : () -> ()
    %cst = arith.constant dense<0.000000e+00> : vector<3x8x32xf32>
    %7 = tpu.matmul %1, %6, %cst {dimension_numbers = #tpu.dot_dimension_numbers<[2], [1], [1], [2], [0, 0, 0, 1, 1, 2], [0], [0]>} : vector<3x8x32xbf16>, vector<3x32x32xbf16>, vector<3x8x32xf32> -> vector<3x8x32xf32>
    "tpu.trace_stop"() : () -> ()
    %8 = vector.extract_strided_slice %5 {offsets = [0, 0], sizes = [3, 32], strides = [1, 1]} : vector<4x32xf32> to vector<3x32xf32>
    %9 = vector.shape_cast %8 : vector<3x32xf32> to vector<3x1x32xf32>
    %10 = vector.broadcast %9 : vector<3x1x32xf32> to vector<3x8x32xf32>
    %11 = arith.addf %7, %10 : vector<3x8x32xf32>
    %12 = vector.extract_strided_slice %11 {offsets = [0, 0, 0], sizes = [1, 8, 32], strides = [1, 1, 1]} : vector<3x8x32xf32> to vector<1x8x32xf32>
    %13 = vector.shape_cast %12 : vector<1x8x32xf32> to vector<8x32xf32>
    %14 = vector.shape_cast %13 : vector<8x32xf32> to vector<8x4x8xf32>
    %15 = tpu.transpose %14, [1, 0, 2] : vector<8x4x8xf32> -> vector<4x8x8xf32>
    %16 = vector.extract_strided_slice %11 {offsets = [1, 0, 0], sizes = [1, 8, 32], strides = [1, 1, 1]} : vector<3x8x32xf32> to vector<1x8x32xf32>
    %17 = vector.shape_cast %16 : vector<1x8x32xf32> to vector<8x32xf32>
    %18 = vector.shape_cast %17 : vector<8x32xf32> to vector<8x4x8xf32>
    %19 = tpu.transpose %18, [1, 0, 2] : vector<8x4x8xf32> -> vector<4x8x8xf32>
    %20 = vector.extract_strided_slice %11 {offsets = [2, 0, 0], sizes = [1, 8, 32], strides = [1, 1, 1]} : vector<3x8x32xf32> to vector<1x8x32xf32>
    %21 = vector.shape_cast %20 : vector<1x8x32xf32> to vector<8x32xf32>
    %22 = vector.shape_cast %21 : vector<8x32xf32> to vector<8x4x8xf32>
    %23 = tpu.transpose %22, [1, 0, 2] : vector<8x4x8xf32> -> vector<4x8x8xf32>
    %24 = arith.truncf %15 : vector<4x8x8xf32> to vector<4x8x8xbf16>
    %25 = arith.truncf %19 : vector<4x8x8xf32> to vector<4x8x8xbf16>
    "tpu.trace_start"() <{level = 10 : i32, message = "hqd,hkd->hqk"}> : () -> ()
    %cst_11 = arith.constant dense<0.000000e+00> : vector<4x8x8xf32>
    %26 = tpu.matmul %24, %25, %cst_11 {dimension_numbers = #tpu.dot_dimension_numbers<[2], [2], [1], [1], [0, 0, 0, 1, 1, 1], [0], [0]>} : vector<4x8x8xbf16>, vector<4x8x8xbf16>, vector<4x8x8xf32> -> vector<4x8x8xf32>
    "tpu.trace_stop"() : () -> ()
    %27 = vector.shape_cast %3 : vector<8x8xf32> to vector<1x8x8xf32>
    %28 = vector.broadcast %27 : vector<1x8x8xf32> to vector<4x8x8xf32>
    %29 = arith.addf %26, %28 : vector<4x8x8xf32>
    %cst_12 = arith.constant dense<0xFF800000> : vector<4x8xf32>
    %30 = vector.multi_reduction <maximumf>, %29, %cst_12 [2] : vector<4x8x8xf32> to vector<4x8xf32>
    %31 = vector.shape_cast %30 : vector<4x8xf32> to vector<4x8x1xf32>
    %32 = vector.broadcast %31 : vector<4x8x1xf32> to vector<4x8x8xf32>
    %33 = arith.subf %29, %32 : vector<4x8x8xf32>
    %34 = math.exp %33 : vector<4x8x8xf32>
    %cst_13 = arith.constant dense<0.000000e+00> : vector<4x8xf32>
    %35 = vector.multi_reduction <add>, %34, %cst_13 [2] : vector<4x8x8xf32> to vector<4x8xf32>
    %36 = vector.shape_cast %35 : vector<4x8xf32> to vector<4x8x1xf32>
    %37 = tpu.reciprocal %36 {approx = true} : vector<4x8x1xf32> -> vector<4x8x1xf32>
    %38 = vector.broadcast %37 : vector<4x8x1xf32> to vector<4x8x8xf32>
    %39 = arith.mulf %34, %38 : vector<4x8x8xf32>
    %40 = arith.truncf %39 : vector<4x8x8xf32> to vector<4x8x8xbf16>
    %41 = arith.truncf %23 : vector<4x8x8xf32> to vector<4x8x8xbf16>
    "tpu.trace_start"() <{level = 10 : i32, message = "hqk,hkd->hqd"}> : () -> ()
    %cst_14 = arith.constant dense<0.000000e+00> : vector<4x8x8xf32>
    %42 = tpu.matmul %40, %41, %cst_14 {dimension_numbers = #tpu.dot_dimension_numbers<[2], [1], [1], [2], [0, 0, 0, 1, 1, 2], [0], [0]>} : vector<4x8x8xbf16>, vector<4x8x8xbf16>, vector<4x8x8xf32> -> vector<4x8x8xf32>
    "tpu.trace_stop"() : () -> ()
    %43 = tpu.transpose %42, [1, 0, 2] : vector<4x8x8xf32> -> vector<8x4x8xf32>
    %44 = vector.shape_cast %43 : vector<8x4x8xf32> to vector<8x32xf32>
    %45 = arith.truncf %44 : vector<8x32xf32> to vector<8x32xbf16>
    %46 = vector.extract_strided_slice %4 {offsets = [3, 0, 0], sizes = [1, 32, 32], strides = [1, 1, 1]} : vector<4x32x32xbf16> to vector<1x32x32xbf16>
    %47 = vector.shape_cast %46 : vector<1x32x32xbf16> to vector<32x32xbf16>
    %cst_15 = arith.constant dense<0.000000e+00> : vector<8x32xf32>
    %48 = tpu.matmul %45, %47, %cst_15 {dimension_numbers = #tpu.dot_dimension_numbers<[1], [0], [0], [1], [0, 0, 1, 1], [], []>} : vector<8x32xbf16>, vector<32x32xbf16>, vector<8x32xf32> -> vector<8x32xf32>
    %49 = vector.extract_strided_slice %5 {offsets = [3, 0], sizes = [1, 32], strides = [1, 1]} : vector<4x32xf32> to vector<1x32xf32>
    %50 = vector.broadcast %49 : vector<1x32xf32> to vector<8x32xf32>
    %51 = arith.addf %48, %50 : vector<8x32xf32>
    %c0_16 = arith.constant 0 : index
    %c0_17 = arith.constant 0 : index
    %c0_18 = arith.constant 0 : index
    %52 = vector.load %arg5[%c0_16, %c0_17, %c0_18] : memref<1x8x32xf32, #tpu.memory_space<vmem>>, vector<1x8x32xf32>
    %53 = vector.shape_cast %52 : vector<1x8x32xf32> to vector<8x32xf32>
    %54 = vector.shape_cast %51 : vector<8x32xf32> to vector<1x8x32xf32>
    tpu.vector_store %arg5[%c0_16, %c0_17, %c0_18], %54 {strides = array<i32>} : memref<1x8x32xf32, #tpu.memory_space<vmem>>, vector<1x8x32xf32>,
    return
  }
  func.func @transform_0(%arg0: i32) -> (i32, i32, i32, i32) {
    %c0_i32 = arith.constant 0 : i32
    %c0_i32_0 = arith.constant 0 : i32
    %c0_i32_1 = arith.constant 0 : i32
    %c0_i32_2 = arith.constant 0 : i32
    return %arg0, %c0_i32, %c0_i32_0, %c0_i32_1 : i32, i32, i32, i32
  }
  func.func @transform_1(%arg0: i32) -> (i32, i32, i32) {
    %c0_i32 = arith.constant 0 : i32
    %c0_i32_0 = arith.constant 0 : i32
    %c0_i32_1 = arith.constant 0 : i32
    return %arg0, %c0_i32, %c0_i32_0 : i32, i32, i32
  }
  func.func @transform_2(%arg0: i32) -> (i32, i32, i32) {
    %c0_i32 = arith.constant 0 : i32
    %c0_i32_0 = arith.constant 0 : i32
    %c0_i32_1 = arith.constant 0 : i32
    %c0_i32_2 = arith.constant 0 : i32
    return %c0_i32, %c0_i32_0, %c0_i32_1 : i32, i32, i32
  }
  func.func @transform_3(%arg0: i32) -> (i32, i32) {
    %c0_i32 = arith.constant 0 : i32
    %c0_i32_0 = arith.constant 0 : i32
    %c0_i32_1 = arith.constant 0 : i32
    return %c0_i32, %c0_i32_0 : i32, i32
  }
  func.func @transform_4(%arg0: i32) -> (i32, i32, i32) {
    %c0_i32 = arith.constant 0 : i32
    %c0_i32_0 = arith.constant 0 : i32
    %c0_i32_1 = arith.constant 0 : i32
    return %arg0, %c0_i32, %c0_i32_0 : i32, i32, i32
  }
}

</mosaic_0001>

<bundles_post_ra>
// kernel: tpu_custom_call.1
= control target key start
LH: loop header
LB: loop body
LE: loop exit
PB: predicated region body
PF: predicated region fallthrough
CT: control target
= control target key end

     0   :  { %s2593_s0 = inlined_call_operand.hbm [shape: bf16[2,3,8,32], index: 0, kind: input, shape index: {}]   ;;  %s2594_s1 = inlined_call_operand.hbm [shape: f32[2,8,8], index: 1, kind: input, shape index: {}]   ;;  %s2595_s2 = inlined_call_operand.hbm [shape: bf16[4,32,32], index: 2, kind: input, shape index: {}]   ;;  %s2596_s3 = inlined_call_operand.vmem [shape: f32[4,32], index: 3, kind: input, shape index: {}]   ;;  %s2597_s4 = inlined_call_operand.hbm [shape: f32[2,8,32], index: 4, kind: output, shape index: {}]  }
   0x1   :  { %2603 = sst [smem:[#allocation13_spill]] %s2593_s0 }
   0x2   :  { %2604 = sst [smem:[#allocation14_spill]] %s2595_s2 }
   0x3   :  { %9 = vsyncpa [#allocation3], 0 }
   0x4   :  { %11 = vsyncpa [#allocation3 + $0x1], 0 }
   0x5   :  { %12 = vsyncpa [#allocation6], 0 }
   0x6   :  { %14 = vsyncpa [#allocation6 + $0x1], 0 }
   0x7   :  { %15 = vsyncpa [#allocation4], 0 }
   0x8   :  { %17 = vsyncpa [#allocation4 + $0x1], 0  ;;  %s2151_s15 = smov 0   ;;  %s2153_s16 = smov 0  }
   0x9   :  { %s2155_s17 = smov 0   ;;  %s2157_s18 = smov 0  }
   0xa LB: > { %s2172_s19 = sadd.s32 4294967295, %s2107_s18   ;;  %s1692_s20 = sadd.s32 4294967294, %s2107_s18   ;;  %s2107_s18 = sphi %s2157_s18, %s2625_s18   ;;  %s2103_s17 = sphi %s2155_s17, %s2624_s17   ;;  %s2099_s16 = sphi %s2153_s16, %s2623_s16   ;;  %s2095_s15 = sphi %s2151_s15, %s2622_s15  }
   0xb   : > { %p43_p0 = scmp.ne.s32.totalorder %s2099_s16, %s2095_s15  ;;  %p2598_p1 = scmp.eq.s32.totalorder %s2172_s19, 0 }
   0xc   : > { %p141_p3 = scmp.eq.s32.totalorder %s1692_s20, 1  ;;  %p1693_p5 = scmp.ge.s32.totalorder %s2107_s18, 1 }
   0xd   : > { %p2181_p4 = por %p2598_p1, %p43_p0  ;;  %p148_p7 = scmp.lt.s32.totalorder %s2107_s18, 3 }
   0xe   : > { %p2186_p6 = por %p141_p3, %p43_p0  ;;  %s2109_s24 = smov [#allocation7]  }
   0xf   : > { %s2605_s21 = scalar_select %p2181_p4, 1, 0 }
  0x10   : > { %s2606_s22 = scalar_select %p2186_p6, 1, 0 }
  0x11   : > { %p2191_p8 = pnand %p1693_p5, %p148_p7  ;;  %s160_s25 = sshll.u32 %s2109_s24, 4  ;;  %s2195_s25 = int_to_ptr.vmem [resolvable:$true] %s160_s25 }
  0x12   : > { %s2207_s27 = sadd.s32 1, %s2107_s18   ;;  %s30_s28 = sadd.s32 1, %s2103_s17 }
  0x13   : > { %s2607_s23 = scalar_select %p2191_p8, 1, 0 }
  0x14   : > { %p1856_p9 = pneg %p2191_p8  ;;  %s27_s29 = ssub.s32 %s2107_s18, %s2207_s27 }
  0x15   : > { %s2609_s2 = sld [smem:[#allocation14_spill]] }
  0x16   : > { %p2202_p11 = pnand %p1856_p9, %p2598_p1 }
  0x18   : > { %p1947_p13 = pneg %p2202_p11 }
  0x1b   : > { %s1945_s6 = scalar_lea.hbm %s2609_s2, 1024 }
  0x1c   : > { %p1946_p12 = scmp.ne.s32.totalorder %s2609_s2, %s1945_s6  ;;  %p1952_p5 = scmp.lt.u32.totalorder %s1945_s6, %s2609_s2 }
  0x1e   : > { %p1948_p0 = pnand %p1947_p13, %p1946_p12 }
  0x20   : > { %p1949_p3 = pneg %p1948_p0 }
  0x22   : > { %p1954_p7 = pnand %p1952_p5, %p1949_p3 }
  0x24   : > { %1957 = shalt.err (!%p1954_p7)
}
  0x25   : > { %s1958_s11 = scalar_lea.vmem %s2195_s25, 1024  ;;  %p1966_p2 = scmp.lt.s32.totalorder %s2195_s25, %s2195_s25 }
  0x26   : > { %p1959_p9 = scmp.ne.s32.totalorder %s2195_s25, %s1958_s11  ;;  %p1967_p6 = scmp.lt.s32.totalorder %s1958_s11, %s1958_s11 }
  0x28   : > { %p1961_p10 = pnand %p1959_p9, %p1947_p13  ;;  %p1968_p4 = por %p1967_p6, %p1966_p2 }
  0x2a   : > { %p1962_p1 = pneg %p1961_p10 }
  0x2c   : > { %p1969_p8 = pnand %p1968_p4, %p1962_p1 }
  0x2e   : > { %1972 = shalt.err (!%p1969_p8)
}
  0x2f   : > { %s2601_s12 = smov 64   ;;  %s2111_s13 = smov 4  }
  0x30   : > { %1859 = dma.hbm_to_vmem [thread:$0]  (!%p2202_p11), %s2609_s2, 1024, %s2195_s25, [#allocation6], %s2601_s12, %s2601_s12, %s2111_s13  }
  0x31   : > { %p28_p1 = scmp.eq.s32.totalorder %s27_s29, 0  ;;  %p37_p2 = scmp.ne.s32.totalorder %s2103_s17, %s2099_s16 }
  0x32   : > { %p38_p4 = scmp.eq.s32.totalorder %s2107_s18, 0  ;;  %p1872_p6 = scmp.lt.s32.totalorder %s2107_s18, 2 }
  0x33   : > { %s2241_s24 = scalar_select %p28_p1, %s2103_s17, %s30_s28  }
  0x34   : > { %p39_p8 = por %p38_p4, %p37_p2  ;;  %p2610_p10 = scmp.eq.s32.totalorder %s2172_s19, 1 }
  0x35   : > { %s2250_s26 = sand.u32 1, %s2103_s17   ;;  %s1844_s5 = smul.u32 192, %s2107_s18 }
  0x36   : > { %p2245_p12 = por %p2610_p10, %p37_p2  ;;  %s1843_s6 = smul.u32 12, %s2250_s26 }
  0x37   : > { %s2612_s0 = sld [smem:[#allocation13_spill]]  ;;  %p2259_p11 = pnand %p1872_p6, %p39_p8 }
  0x38   : > { %s2611_s30 = scalar_select %p2245_p12, 1, 0 }
  0x39   : > { %s198_s8 = sand.u32 1, %s2107_s18   ;;  %s181_s9 = scalar_lea.vmem [#allocation2], %s1843_s6 }
  0x3a   : > { %s188_s10 = sshll.u32 %s181_s9, 4  ;;  %s178_s11 = scalar_lea.sflag [#allocation3], %s2250_s26  ;;  %s2264_s10 = int_to_ptr.vmem [resolvable:$true] %s188_s10 }
  0x3b   : > { %p1975_p0 = pneg %p2259_p11 }
  0x3d   : > { %s2257_s29 = scalar_lea.hbm %s2612_s0, %s1844_s5  ;;  %s1978_s7 = scalar_lea.hbm %s2612_s0, 384 }
  0x3e   : > { %s1973_s14 = scalar_lea.hbm %s2257_s29, 192  ;;  %p1979_p7 = scmp.lt.u32.totalorder %s2257_s29, %s2612_s0 }
  0x3f   : > { %p1974_p13 = scmp.ne.s32.totalorder %s2257_s29, %s1973_s14  ;;  %p1980_p9 = scmp.lt.u32.totalorder %s1978_s7, %s1973_s14 }
  0x40   : > { %p1982_p2 = scmp.lt.u32.totalorder %s1973_s14, %s2257_s29 }
  0x41   : > { %p1976_p3 = pnand %p1975_p0, %p1974_p13  ;;  %p1981_p1 = por %p1980_p9, %p1979_p7 }
  0x43   : > { %p1977_p5 = pneg %p1976_p3  ;;  %p1983_p4 = por %p1982_p2, %p1981_p1 }
  0x45   : > { %p1984_p6 = pnand %p1983_p4, %p1977_p5 }
  0x47   : > { %1987 = shalt.err (!%p1984_p6)
}
  0x48   : > { %s1988_s6 = scalar_lea.vmem %s2264_s10, 192  ;;  %s2112_s9 = smov [#allocation2]  }
  0x49   : > { %p1989_p8 = scmp.ne.s32.totalorder %s2264_s10, %s1988_s6  ;;  %s1993_s20 = sshll.u32 %s2112_s9, 4  ;;  %s1994_s20 = int_to_ptr.vmem [resolvable:$false] %s1993_s20 }
  0x4a   : > { %s1995_s12 = scalar_lea.vmem %s1994_s20, 384  ;;  %p1996_p3 = scmp.lt.s32.totalorder %s2264_s10, %s1994_s20 }
  0x4b   : > { %p1991_p10 = pnand %p1989_p8, %p1975_p0  ;;  %p1997_p7 = scmp.lt.s32.totalorder %s1995_s12, %s1988_s6 }
  0x4d   : > { %p1992_p13 = pneg %p1991_p10  ;;  %p1998_p9 = por %p1997_p7, %p1996_p3 }
  0x4f   : > { %p1999_p1 = pnand %p1998_p9, %p1992_p13 }
  0x51   : > { %2002 = shalt.err (!%p1999_p1)
}
  0x52   : > { %s2614_s14 = smov 64   ;;  %s1697_s5 = sshll.u32 %s2250_s26, 3 }
  0x53   : > { %1863 = dma.hbm_to_vmem [thread:$0]  (!%p2259_p11), %s2257_s29, 192, %s2264_s10, %s178_s11, %s2614_s14, %s2614_s14, %s2111_s13  }
  0x54   : > { %s1698_s7 = sshll.u32 %s2107_s18, 7  ;;  %s202_s20 = scalar_lea.vmem [#allocation5], %s1697_s5 }
  0x55   : > { %s2302_s9 = scalar_lea.hbm %s2594_s1, %s1698_s7  ;;  %s209_s12 = sshll.u32 %s202_s20, 4  ;;  %s210_s12 = int_to_ptr.vmem [resolvable:$true] %s209_s12 }
  0x56   : > { %s199_s0 = scalar_lea.sflag [#allocation6], %s198_s8  ;;  %s2003_s2 = scalar_lea.hbm %s2302_s9, 128 }
  0x57   : > { %p2004_p5 = scmp.ne.s32.totalorder %s2302_s9, %s2003_s2  ;;  %s2008_s29 = scalar_lea.hbm %s2594_s1, 256 }
  0x58   : > { %p2009_p6 = scmp.lt.u32.totalorder %s2302_s9, %s2594_s1  ;;  %p2010_p8 = scmp.lt.u32.totalorder %s2008_s29, %s2003_s2 }
  0x59   : > { %p2006_p2 = pnand %p2004_p5, %p1975_p0  ;;  %p2012_p13 = scmp.lt.u32.totalorder %s2003_s2, %s2302_s9 }
  0x5a   : > { %p2011_p10 = por %p2010_p8, %p2009_p6 }
  0x5b   : > { %p2007_p4 = pneg %p2006_p2 }
  0x5c   : > { %p2013_p3 = por %p2012_p13, %p2011_p10 }
  0x5e   : > { %p2014_p7 = pnand %p2013_p3, %p2007_p4 }
  0x60   : > { %2017 = shalt.err (!%p2014_p7)
}
  0x61   : > { %s2018_s8 = scalar_lea.vmem %s210_s12, 128  ;;  %s2113_s14 = smov [#allocation5]  }
  0x62   : > { %p2019_p9 = scmp.ne.s32.totalorder %s210_s12, %s2018_s8  ;;  %s2023_s5 = sshll.u32 %s2113_s14, 4  ;;  %s2024_s5 = int_to_ptr.vmem [resolvable:$false] %s2023_s5 }
  0x63   : > { %s2025_s7 = scalar_lea.vmem %s2024_s5, 256  ;;  %p2026_p2 = scmp.lt.s32.totalorder %s210_s12, %s2024_s5 }
  0x64   : > { %p2021_p1 = pnand %p2019_p9, %p1975_p0  ;;  %p2027_p12 = scmp.lt.s32.totalorder %s2025_s7, %s2018_s8 }
  0x66   : > { %p2022_p5 = pneg %p2021_p1  ;;  %p2028_p6 = por %p2027_p12, %p2026_p2 }
  0x68   : > { %p2029_p8 = pnand %p2028_p6, %p2022_p5 }
  0x6a   : > { %2032 = shalt.err (!%p2029_p8)
}
  0x6b   : > { %1866 = dma.hbm_to_vmem [thread:$0]  (!%p2259_p11), %s2302_s9, 128, %s210_s12, %s199_s0  }
  0x6c   : > { %p2615_p4 = scmp.ne.s32.totalorder %s2607_s23, 0 }
  0x6d   : > { %s2328_s2 = sand.u32 (!%p2615_p4), 1, %s2099_s16   ;;  %p2616_p12 = scmp.ne.s32.totalorder (!%p2615_p4), %s2605_s21, 0 }
  0x6e   : > { %218 = sbr.rel (%p2615_p4) target bundleno = 1659 (0x67b), region = 36  ;;  %s221_s6 = scalar_lea.sflag (!%p2615_p4), [#allocation3], %s2328_s2 }
  0x6f   : > { %s1845_s25 = smul.u32 (!%p2615_p4), 12, %s2328_s2 }
  0x71   : > { %s2332_s20 = scalar_lea.vmem (!%p2615_p4), [#allocation2], %s1845_s25 }
  0x75   : > { %2078 = dma.done.wait (%p2616_p12), %s221_s6, 192  }
  0x76   : > { %2080 = vsyncadd (%p2616_p12), %s221_s6, 4294967104  ;;  %s229_s0 = sand.u32 1, %s2172_s19   ;;  %s1700_s23 = sshll.u32 %s2328_s2, 3 }
  0x77   : > { %s230_s28 = scalar_lea.sflag [#allocation6], %s229_s0  ;;  %s2342_s9 = scalar_lea.vmem [#allocation5], %s1700_s23 }
  0x78   : > { %2082 = dma.done.wait (%p2616_p12), %s230_s28, 128  }
  0x79   : > { %2084 = vsyncadd (%p2616_p12), %s230_s28, 4294967168  ;;  %p2617_p11 = scmp.eq.s32.totalorder %s2172_s19, 0 }
  0x7b   : > { %2086 = dma.done.wait (%p2617_p11), [#allocation6], 1024   ;;  %p2618_p0 = pmov %p2617_p11 }
  0x7c   : > { %v2114_v0 = vmov 0.0   ;;  %vm2115_vm0 = vmmov 0   ;;  %v1921_v1 = vld [vmem:[#allocation7 + $0x10] sm:$0xff]   ;;  %v1922_v2 = vld [vmem:[#allocation7] sm:$0xff]   ;;  %v1923_v3 = vld [vmem:[#allocation7 + $0x18] sm:$0xff]   ;;  %vm340_vm1 = vcmask 261120   ;;  %v293_v9 = vlaneseq }
  0x7d   : > { %2088 = vsyncadd (%p2618_p0), [#allocation6], 4294966272  ;;  %1771 = vmatprep.subr.bf16.mxu1 %v2114_v0  ;;  %1763 = vmatprep.subr.bf16.mxu0 %v2114_v0  ;;  %v269_v4 = vld [vmem:[%s2332_s20 + $0x4] sm:$0xf]  ;;  %v268_v6 = vld [vmem:[%s2332_s20] sm:$0xf] }
  0x7e   : > { %1775 = vmatprep.mubr.msk.bf16.mxu1 %vm2115_vm0, %v2114_v0  ;;  %1767 = vmatprep.mubr.msk.bf16.mxu0 %vm2115_vm0, %v2114_v0  ;;  %v1924_v5 = vld [vmem:[#allocation7 + $0x8] sm:$0xff]   ;;  %v2116_v7 = vmov 1966171168   ;;  %v2370_v11 = vshrl.u32 %v293_v9, 7  ;;  %v2376_v13 = vld [vmem:[%s2596_s3] sm:$0xf] }
  0x7f   : > { %1772 = vmatpush3.bf16.msra.mxu1 %v1921_v1  ;;  %1764 = vmatpush3.bf16.msra.mxu0 %v1922_v2  ;;  %v291_v8 = vunpack.c.l.s4 %v2116_v7  ;;  %v1925_v25 = vld [vmem:[#allocation7 + $0x20] sm:$0xff]   ;;  %s2117_s13 = smov 104   ;;  %s2118_s26 = smov 120   ;;  %v1926_v32 = vld [vmem:[#allocation7 + $0x28] sm:$0xff]   ;;  %v2120_v34 = vmov 1983009808  }
  0x80   : > { %1773 = vmatprep.subr.bf16.mxu1 %v2114_v0  ;;  %1765 = vmatprep.subr.bf16.mxu0 %v2114_v0  ;;  %v2380_v17 = vsub.s32 0, %v2370_v11  ;;  %s2119_s29 = smov 112   ;;  %v270_v33 = vld [vmem:[%s2332_s20 + $0x8] sm:$0xf]  ;;  %v507_v35 = vunpack.c.l.s4 %v2120_v34  ;;  %v2121_v36 = vmov 1934713408  }
  0x81   : > { %v292_v10 = vunpack.c.0.s8 %v291_v8  ;;  %v539_v37 = vunpack.c.l.s4 %v2121_v36  ;;  %vm940_vm2 = vcmask 64512   ;;  %vm1180_vm3 = vcmask 1043456   ;;  %s2122_s10 = smov 16   ;;  %s2123_s11 = smov 8  }
  0x82   : > { %v508_v38 = vunpack.c.0.s8 %v507_v35  ;;  %s2124_s8 = smov 24   ;;  %vm1511_vm4 = vcmask 130048   ;;  %vm1513_vm5 = vcmask 195584   ;;  %s1732_s14 = sshll.u32 %s2172_s19, 7 }
  0x83   : > { %1774 = vmatpush3.bf16.msra.mxu1 %v1923_v3  ;;  %1766 = vmatpush3.bf16.msra.mxu0 %v1924_v5  ;;  %v295_v12 = vsub.s32 %v292_v10, %v2370_v11  ;;  %v540_v41 = vunpack.c.0.s8 %v539_v37  ;;  %s266_s5 = scalar_lea.vmem [#allocation8], %s1700_s23  ;;  %s2548_s20 = scalar_lea.hbm %s2597_s4, %s1732_s14 }
  0x84   : > { %1787 = vmatprep.subr.bf16.mxu1 %v2114_v0  ;;  %1779 = vmatprep.subr.bf16.mxu0 %v2114_v0  ;;  %v2400_v42 = vsub.s32 %v508_v38, %v2370_v11  ;;  %s1590_s7 = sshll.u32 %s266_s5, 4  ;;  %s1577_s19 = scalar_lea.sflag [#allocation4], %s2328_s2  ;;  %s2550_s7 = int_to_ptr.vmem [resolvable:$true] %s1590_s7 }
  0x85   : > { %v296_v14 = vrot.slane %v2376_v13, %v295_v12  ;;  %v2403_v49 = vsub.s32 %v540_v41, %v2370_v11  ;;  %s2033_s0 = scalar_lea.vmem %s2550_s7, 128  ;;  %p2619_p13 = scmp.ne.s32.totalorder %s2611_s30, 0 }
  0x86   : > { %1776 = vmatmul.mubr.msk.bf16.vlgmr.msra.gmra.mrb[0].mxu1 %vm340_vm1, %v269_v4  ;;  %1768 = vmatmul.mubr.msk.bf16.vlgmr.msra.gmra.mrb[0].mxu0 %vm340_vm1, %v268_v6  ;;  %p2034_p10 = scmp.ne.s32.totalorder %s2550_s7, %s2033_s0  ;;  %s2125_s23 = smov [#allocation8]  }
  0x87   : > { %1789 = vmatprep.mubr.msk.bf16.mxu1 %vm2115_vm0, %v2114_v0  ;;  %1783 = vmatprep.mubr.msk.bf16.mxu0 %vm2115_vm0, %v2114_v0  ;;  %v297_v15 = vcombine.high %v296_v14, %v296_v14  ;;  %v2382_v18 = vrot.slane %v296_v14, %v295_v12  ;;  %s2037_s28 = sshll.u32 %s2125_s23, 4  ;;  %s2038_s28 = int_to_ptr.vmem [resolvable:$false] %s2037_s28 }
  0x88   : > { %1780 = vmatpush3.bf16.msra.mxu0 %v1925_v25  ;;  %p2035_p3 = pnand %p2034_p10, %p2619_p13  ;;  %p2040_p9 = scmp.lt.s32.totalorder %s2550_s7, %s2038_s28 }
  0x89   : > { %v311_v16 = vrot.slane %v297_v15, %v295_v12  ;;  %v316_v20 = vrot.slane %v2382_v18, %v2380_v17  ;;  %1781 = vmatprep.subr.bf16.mxu0 %v2114_v0 }
  0x8a   : > { %p2036_p7 = pneg %p2035_p3 }
  0x8b   : > { %v320_v19 = vrot.slane %v311_v16, %v2380_v17 }
  0x8c   : > { %1782 = vmatpush3.bf16.msra.mxu0 %v1926_v32 }
  0x8d   : > { %1793 = vmatprep.subr.bf16.mxu0 %v2114_v0 }
  0x8f   : > { %1784 = vmatmul.mubr.msk.bf16.vlgmr.msra.gmra.mrb[4].mxu0 %vm340_vm1, %v270_v33 }
  0x90   : > { %1795 = vmatprep.mubr.msk.bf16.mxu0 %vm2115_vm0, %v2114_v0 }
 0x159   : > { %v433_v21 = vpop.f32.mrb[0].mxu1  ;;  %v378_v24 = vpop.f32.mrb[0].mxu0 }
 0x15a   : > { %v434_v22 = vadd.f32 %v433_v21, %v320_v19  ;;  %v1777_v23 = vpop.f32.mrb[1].mxu1  ;;  %v1769_v27 = vpop.f32.mrb[1].mxu0  ;;  %v379_v29 = vadd.f32 %v378_v24, %v316_v20 }
 0x15b   : > { %v436_v26 = vpop.f32.mrb[2].mxu1  ;;  %v381_v30 = vpop.f32.mrb[2].mxu0 }
 0x15c   : > { %647 = vrot.lane.b32.xlu1 %v434_v22, %s2117_s13  ;;  %641 = vrot.lane.b32.xlu0 %v434_v22, %s2118_s26  ;;  %v1778_v28 = vpop.f32.mrb[3].mxu1  ;;  %v1770_v31 = vpop.f32.mrb[3].mxu0 }
 0x160   : > { %644 = vrot.lane.b32.xlu0 %v434_v22, %s2119_s29  ;;  %495 = vrot.lane.b32.xlu1 %v379_v29, %s2118_s26 }
 0x164   : > { %498 = vrot.lane.b32.xlu0 %v379_v29, %s2119_s29  ;;  %501 = vrot.lane.b32.xlu1 %v379_v29, %s2117_s13 }
 0x1ce   : > { %v648_v39 = vpop.permute.xlu1 %647  ;;  %v642_v40 = vpop.permute.xlu0 %641 }
 0x1cf   : > { %v666_v43 = vcombine.low %v642_v40, %v648_v39  ;;  %v667_v44 = vcombine.high %v642_v40, %v648_v39 }
 0x1d1   : > { %v674_v50 = vrot.slane %v666_v43, %v2400_v42  ;;  %v681_v51 = vrot.slane %v667_v44, %v2400_v42 }
 0x1d2   : > { %v645_v45 = vpop.permute.xlu0 %644  ;;  %v496_v46 = vpop.permute.xlu1 %495 }
 0x1d3   : > { %v650_v47 = vcombine.low %v434_v22, %v645_v45  ;;  %v651_v48 = vcombine.high %v434_v22, %v645_v45 }
 0x1d5   : > { %v658_v52 = vrot.slane %v650_v47, %v2400_v42  ;;  %v665_v53 = vrot.slane %v651_v48, %v2400_v42 }
 0x1d6   : > { %v499_v54 = vpop.permute.xlu0 %498  ;;  %v502_v55 = vpop.permute.xlu1 %501 }
 0x1d7   : > { %v682_v56 = vcombine.low %v658_v52, %v674_v50  ;;  %v683_v57 = vcombine.high %v658_v52, %v674_v50  ;;  %v698_v58 = vcombine.low %v665_v53, %v681_v51  ;;  %v699_v59 = vcombine.high %v665_v53, %v681_v51 }
 0x1d8   : > { %v504_v60 = vcombine.low %v379_v29, %v499_v54  ;;  %v505_v61 = vcombine.high %v379_v29, %v499_v54  ;;  %v520_v62 = vcombine.low %v496_v46, %v502_v55  ;;  %v521_v63 = vcombine.high %v496_v46, %v502_v55 }
 0x1d9   : > { %v690_v1 = vrot.slane %v682_v56, %v2403_v49  ;;  %v697_v2 = vrot.slane %v683_v57, %v2403_v49  ;;  %v706_v3 = vrot.slane %v698_v58, %v2403_v49  ;;  %v713_v4 = vrot.slane %v699_v59, %v2403_v49 }
 0x1da   : > { %v512_v5 = vrot.slane %v504_v60, %v2400_v42  ;;  %v519_v6 = vrot.slane %v505_v61, %v2400_v42  ;;  %v528_v7 = vrot.slane %v520_v62, %v2400_v42  ;;  %v535_v8 = vrot.slane %v521_v63, %v2400_v42 }
 0x1db   : > { %v718_v9 = vcombine.low %v690_v1, %v697_v2  ;;  %v1714_v10 = vcombine.high %v690_v1, %v697_v2  ;;  %v734_v12 = vcombine.low %v706_v3, %v713_v4  ;;  %v1715_v14 = vcombine.high %v706_v3, %v713_v4 }
 0x1dc   : > { %v536_v15 = vcombine.low %v512_v5, %v528_v7  ;;  %v537_v16 = vcombine.high %v512_v5, %v528_v7  ;;  %v552_v19 = vcombine.low %v519_v6, %v535_v8  ;;  %v553_v20 = vcombine.high %v519_v6, %v535_v8 }
 0x1dd   : > { %v725_v21 = vrot.slane %v718_v9, %v2400_v42  ;;  %v733_v22 = vrot.slane %v1714_v10, %v2400_v42  ;;  %v741_v23 = vrot.slane %v734_v12, %v2400_v42  ;;  %v749_v24 = vrot.slane %v1715_v14, %v2400_v42  ;;  %v488_v14 = vpop.f32.mrb[4].mxu0 }
 0x1de   : > { %v544_v25 = vrot.slane %v536_v15, %v2403_v49  ;;  %v551_v26 = vrot.slane %v537_v16, %v2403_v49  ;;  %v560_v27 = vrot.slane %v552_v19, %v2403_v49  ;;  %v567_v28 = vrot.slane %v553_v20, %v2403_v49  ;;  %v1785_v15 = vpop.f32.mrb[5].mxu0  ;;  %v271_v20 = vld [vmem:[%s2342_s9] sm:$0xff]  ;;  %s2039_s9 = scalar_lea.vmem %s2038_s28, 256 }
 0x1df   : > { %v750_v29 = vcombine.low %v725_v21, %v733_v22  ;;  %v766_v30 = vcombine.low %v741_v23, %v749_v24  ;;  %v751_v31 = vcombine.high %v725_v21, %v733_v22  ;;  %v767_v32 = vcombine.high %v741_v23, %v749_v24  ;;  %v491_v16 = vpop.f32.mrb[6].mxu0  ;;  %p2041_p1 = scmp.lt.s32.totalorder %s2039_s9, %s2033_s0 }
 0x1e0   : > { %v572_v33 = vcombine.low %v544_v25, %v551_v26  ;;  %v1712_v34 = vcombine.high %v544_v25, %v551_v26  ;;  %v588_v35 = vcombine.low %v560_v27, %v567_v28  ;;  %v1713_v36 = vcombine.high %v560_v27, %v567_v28  ;;  %v1786_v19 = vpop.f32.mrb[7].mxu0 }
 0x1e1   : > { %v758_v37 = vrot.slane %v750_v29, %v2403_v49  ;;  %v774_v38 = vrot.slane %v766_v30, %v2403_v49  ;;  %v765_v46 = vrot.slane %v751_v31, %v2403_v49  ;;  %v781_v47 = vrot.slane %v767_v32, %v2403_v49  ;;  %p2042_p5 = por %p2041_p1, %p2040_p9 }
 0x1e2   : > { %v579_v39 = vrot.slane %v572_v33, %v2400_v42  ;;  %v587_v40 = vrot.slane %v1712_v34, %v2400_v42  ;;  %v595_v41 = vrot.slane %v588_v35, %v2400_v42  ;;  %v603_v43 = vrot.slane %v1713_v36, %v2400_v42 }
 0x1e3   : > { %v782_v44 = vcombine.low %v758_v37, %v774_v38  ;;  %v783_v45 = vcombine.high %v758_v37, %v774_v38  ;;  %v784_v57 = vcombine.low %v765_v46, %v781_v47  ;;  %v785_v58 = vcombine.high %v765_v46, %v781_v47  ;;  %p2043_p2 = pnand %p2042_p5, %p2036_p7 }
 0x1e4   : > { %v604_v48 = vcombine.low %v579_v39, %v587_v40  ;;  %v620_v50 = vcombine.low %v595_v41, %v603_v43  ;;  %v605_v59 = vcombine.high %v579_v39, %v587_v40  ;;  %v621_v60 = vcombine.high %v595_v41, %v603_v43 }
 0x1e5   : > { %v936_v51 = vpack.c.bf16 %v782_v44, %v782_v44  ;;  %v937_v52 = vpack.c.bf16 %v783_v45, %v783_v45  ;;  %v938_v63 = vpack.c.bf16 %v784_v57, %v784_v57  ;;  %v939_v1 = vpack.c.bf16 %v785_v58, %v785_v58 }
 0x1e6   : > { %v612_v53 = vrot.slane %v604_v48, %v2403_v49  ;;  %v628_v54 = vrot.slane %v620_v50, %v2403_v49  ;;  %v619_v4 = vrot.slane %v605_v59, %v2403_v49  ;;  %v635_v5 = vrot.slane %v621_v60, %v2403_v49 }
 0x1e7   : > { %v945_v55 = vsel %vm940_vm2, %v936_v51, 0  ;;  %v991_v56 = vsel %vm940_vm2, %v937_v52, 0  ;;  %v1037_v6 = vsel %vm940_vm2, %v938_v63, 0  ;;  %v1083_v7 = vsel %vm940_vm2, %v939_v1, 0 }
 0x1e8   : > { %1788 = vmatpush3.bf16.xpose.msra.mxu1 %v945_v55  ;;  %1794 = vmatpush3.bf16.xpose.msra.mxu0 %v991_v56  ;;  %v636_v61 = vcombine.low %v612_v53, %v628_v54  ;;  %v637_v62 = vcombine.high %v612_v53, %v628_v54  ;;  %v638_v8 = vcombine.low %v619_v4, %v635_v5 }
 0x1e9   : > { %1799 = vmatprep.subr.bf16.mxu1 %v2114_v0  ;;  %1805 = vmatprep.subr.bf16.mxu0 %v2114_v0  ;;  %v639_v9 = vcombine.high %v619_v4, %v635_v5  ;;  %v312_v40 = vcombine.high %v2382_v18, %v2382_v18 }
 0x1ea   : > { %v932_v2 = vpack.c.bf16 %v636_v61, %v636_v61  ;;  %v933_v3 = vpack.c.bf16 %v637_v62, %v637_v62  ;;  %v934_v10 = vpack.c.bf16 %v638_v8, %v638_v8 }
 0x1eb   : > { %v935_v12 = vpack.c.bf16 %v639_v9, %v639_v9  ;;  %v324_v46 = vrot.slane %v312_v40, %v2380_v17 }
 0x1ed   : > { %v489_v48 = vadd.f32 %v488_v14, %v324_v46 }
 0x1ef   : > { %1790 = vmatmul.mubr.msk.bf16.vlgmr.msra.gmra.mrb[4].mxu1 %vm940_vm2, %v932_v2  ;;  %1796 = vmatmul.mubr.msk.bf16.vlgmr.msra.gmra.mrb[8].mxu0 %vm940_vm2, %v933_v3 }
 0x1f0   : > { %1800 = vmatpush3.bf16.xpose.msra.mxu1 %v1037_v6  ;;  %1806 = vmatpush3.bf16.xpose.msra.mxu0 %v1083_v7 }
 0x1f1   : > { %1801 = vmatprep.mubr.msk.bf16.mxu1 %vm2115_vm0, %v2114_v0  ;;  %1807 = vmatprep.mubr.msk.bf16.mxu0 %vm2115_vm0, %v2114_v0 }
 0x1f2   : > { %1811 = vmatprep.subr.bf16.mxu1 %v2114_v0  ;;  %1817 = vmatprep.subr.bf16.mxu0 %v2114_v0 }
 0x1f7   : > { %1802 = vmatmul.mubr.msk.bf16.vlgmr.msra.gmra.mrb[8].mxu1 %vm940_vm2, %v934_v10  ;;  %1808 = vmatmul.mubr.msk.bf16.vlgmr.msra.gmra.mrb[12].mxu0 %vm940_vm2, %v935_v12 }
 0x1f8   : > { %1813 = vmatprep.mubr.msk.bf16.mxu1 %vm2115_vm0, %v2114_v0  ;;  %1819 = vmatprep.mubr.msk.bf16.mxu0 %vm2115_vm0, %v2114_v0 }
 0x2c2   : > { %v981_v21 = vpop.f32.mrb[4].mxu1  ;;  %v1027_v22 = vpop.f32.mrb[8].mxu0 }
 0x2c3   : > { %v982_v23 = vadd.f32 %v981_v21, %v271_v20  ;;  %v1028_v24 = vadd.f32 %v1027_v22, %v271_v20  ;;  %v1791_v25 = vpop.f32.mrb[5].mxu1  ;;  %v1797_v26 = vpop.f32.mrb[9].mxu0 }
 0x2c4   : > { %v984_v27 = vpop.f32.mrb[6].mxu1  ;;  %v1030_v28 = vpop.f32.mrb[10].mxu0 }
 0x2c5   : > { %v1792_v29 = vpop.f32.mrb[7].mxu1  ;;  %v1798_v30 = vpop.f32.mrb[11].mxu0  ;;  %v1125_v31 = vsel %vm940_vm2, %v982_v23, -inf  ;;  %v1128_v32 = vsel %vm940_vm2, %v1028_v24, -inf }
 0x2c6   : > { %1126 = vmax.xlane.f32.xlu0 %v1125_v31  ;;  %1129 = vmax.xlane.f32.xlu1 %v1128_v32 }
 0x2ca   : > { %v1073_v33 = vpop.f32.mrb[8].mxu1  ;;  %v1119_v34 = vpop.f32.mrb[12].mxu0 }
 0x2cb   : > { %v1074_v35 = vadd.f32 %v1073_v33, %v271_v20  ;;  %v1803_v36 = vpop.f32.mrb[9].mxu1  ;;  %v1809_v37 = vpop.f32.mrb[13].mxu0  ;;  %v1120_v41 = vadd.f32 %v1119_v34, %v271_v20 }
 0x2cc   : > { %v1076_v38 = vpop.f32.mrb[10].mxu1  ;;  %v1122_v39 = vpop.f32.mrb[14].mxu0 }
 0x2cd   : > { %v1804_v43 = vpop.f32.mrb[11].mxu1  ;;  %v1810_v44 = vpop.f32.mrb[15].mxu0  ;;  %v1131_v45 = vsel %vm940_vm2, %v1074_v35, -inf  ;;  %v1134_v47 = vsel %vm940_vm2, %v1120_v41, -inf }
 0x2ce   : > { %1132 = vmax.xlane.f32.xlu0 %v1131_v45 }
 0x2d2   : > { %1135 = vmax.xlane.f32.xlu0 %v1134_v47 }
 0x2d7   : > { %787 = vrot.lane.b32.xlu1 %v489_v48, %s2118_s26 }
 0x353   : > { %v1127_v50 = vpop.xlane.xlu0 %1126  ;;  %v1130_v51 = vpop.xlane.xlu1 %1129 }
 0x354   : > { %v1137_v52 = vsub.f32 %v982_v23, %v1127_v50  ;;  %v1138_v53 = vsub.f32 %v1028_v24, %v1130_v51 }
 0x356   : > { %v1141_v54 = vmul.f32 1.442695, %v1137_v52  ;;  %v1143_v18 = vmul.f32 1.442695, %v1138_v53 }
 0x357   : > { %v788_v5 = vpop.permute.xlu1 %787 }
 0x358   : > { %1929 = vpow2.f32 %v1141_v54 }
 0x359   : > { %1931 = vpow2.f32 %v1143_v18 }
 0x35b   : > { %v1133_v58 = vpop.xlane.xlu0 %1132 }
 0x35c   : > { %v1139_v60 = vsub.f32 %v1074_v35, %v1133_v58 }
 0x35e   : > { %v1145_v62 = vmul.f32 1.442695, %v1139_v60 }
 0x35f   : > { %v1136_v59 = vpop.xlane.xlu0 %1135 }
 0x360   : > { %v1140_v61 = vsub.f32 %v1120_v41, %v1136_v59  ;;  %1933 = vpow2.f32 %v1145_v62 }
 0x362   : > { %v2466_v55 = vpop.eup %1929  ;;  %v1147_v63 = vmul.f32 1.442695, %v1140_v61 }
 0x363   : > { %v2468_v56 = vpop.eup %1931  ;;  %v1149_v17 = vsel %vm940_vm2, %v2466_v55, 0.0 }
 0x364   : > { %1150 = vadd.xlane.f32.xlu1 %v1149_v17  ;;  %v1152_v57 = vsel %vm940_vm2, %v2468_v56, 0.0  ;;  %1935 = vpow2.f32 %v1147_v63 }
 0x365   : > { %1153 = vadd.xlane.f32.xlu0 %v1152_v57 }
 0x36a   : > { %v2476_v1 = vpop.eup %1933 }
 0x36b   : > { %v1155_v3 = vsel %vm940_vm2, %v2476_v1, 0.0 }
 0x36e   : > { %v2478_v2 = vpop.eup %1935 }
 0x36f   : > { %v1158_v4 = vsel %vm940_vm2, %v2478_v2, 0.0 }
 0x375   : > { %793 = vrot.lane.b32.xlu1 %v489_v48, %s2117_s13 }
 0x37b   : > { %790 = vrot.lane.b32.xlu0 %v489_v48, %s2119_s29 }
 0x399   : > { %1156 = vadd.xlane.f32.xlu1 %v1155_v3 }
 0x39a   : > { %1159 = vadd.xlane.f32.xlu0 %v1158_v4 }
 0x3f1   : > { %v1151_v6 = vpop.xlane.xlu1 %1150 }
 0x3f2   : > { %v1154_v7 = vpop.xlane.xlu0 %1153  ;;  %1937 = vrcp.f32 %v1151_v6 }
 0x3f3   : > { %1939 = vrcp.f32 %v1154_v7 }
 0x3f5   : > { %v794_v8 = vpop.permute.xlu1 %793 }
 0x3f6   : > { %v812_v9 = vcombine.low %v788_v5, %v794_v8  ;;  %v813_v10 = vcombine.high %v788_v5, %v794_v8  ;;  %v791_v12 = vpop.permute.xlu0 %790 }
 0x3f7   : > { %v796_v14 = vcombine.low %v489_v48, %v791_v12  ;;  %v797_v15 = vcombine.high %v489_v48, %v791_v12 }
 0x3f8   : > { %v820_v16 = vrot.slane %v812_v9, %v2400_v42  ;;  %v827_v19 = vrot.slane %v813_v10, %v2400_v42 }
 0x3f9   : > { %v804_v20 = vrot.slane %v796_v14, %v2400_v42  ;;  %v811_v21 = vrot.slane %v797_v15, %v2400_v42 }
 0x3fb   : > { %v828_v22 = vcombine.low %v804_v20, %v820_v16  ;;  %v829_v23 = vcombine.high %v804_v20, %v820_v16  ;;  %v844_v24 = vcombine.low %v811_v21, %v827_v19  ;;  %v845_v25 = vcombine.high %v811_v21, %v827_v19 }
 0x3fc   : > { %v1938_v45 = vpop.eup %1937 }
 0x3fd   : > { %v836_v26 = vrot.slane %v828_v22, %v2403_v49  ;;  %v843_v27 = vrot.slane %v829_v23, %v2403_v49  ;;  %v852_v28 = vrot.slane %v844_v24, %v2403_v49  ;;  %v859_v29 = vrot.slane %v845_v25, %v2403_v49  ;;  %v1940_v48 = vpop.eup %1939 }
 0x3fe   : > { %v1165_v54 = vmul.f32 %v1938_v45, %v2466_v55  ;;  %v1166_v18 = vmul.f32 %v1940_v48, %v2468_v56 }
 0x3ff   : > { %v864_v30 = vcombine.low %v836_v26, %v843_v27  ;;  %v1716_v31 = vcombine.high %v836_v26, %v843_v27  ;;  %v880_v32 = vcombine.low %v852_v28, %v859_v29  ;;  %v1717_v33 = vcombine.high %v852_v28, %v859_v29 }
 0x400   : > { %v1169_v62 = vpack.c.bf16 %v1165_v54, %v1165_v54  ;;  %v1170_v63 = vpack.c.bf16 %v1166_v18, %v1166_v18 }
 0x401   : > { %v871_v34 = vrot.slane %v864_v30, %v2400_v42  ;;  %v879_v35 = vrot.slane %v1716_v31, %v2400_v42  ;;  %v887_v36 = vrot.slane %v880_v32, %v2400_v42  ;;  %v895_v37 = vrot.slane %v1717_v33, %v2400_v42 }
 0x403   : > { %v896_v38 = vcombine.low %v871_v34, %v879_v35  ;;  %v897_v39 = vcombine.high %v871_v34, %v879_v35  ;;  %v912_v40 = vcombine.low %v887_v36, %v895_v37  ;;  %v913_v41 = vcombine.high %v887_v36, %v895_v37 }
 0x405   : > { %v904_v43 = vrot.slane %v896_v38, %v2403_v49  ;;  %v911_v44 = vrot.slane %v897_v39, %v2403_v49  ;;  %v920_v46 = vrot.slane %v912_v40, %v2403_v49  ;;  %v927_v47 = vrot.slane %v913_v41, %v2403_v49  ;;  %v1927_v41 = vld [vmem:[#allocation7 + $0x30] sm:$0xff]  }
 0x407   : > { %v928_v50 = vcombine.low %v904_v43, %v920_v46  ;;  %v929_v51 = vcombine.high %v904_v43, %v920_v46  ;;  %v930_v52 = vcombine.low %v911_v44, %v927_v47  ;;  %v931_v53 = vcombine.high %v911_v44, %v927_v47 }
 0x409   : > { %v1173_v17 = vpack.c.bf16 %v928_v50, %v928_v50  ;;  %v1174_v57 = vpack.c.bf16 %v929_v51, %v929_v51  ;;  %v1175_v60 = vpack.c.bf16 %v930_v52, %v930_v52  ;;  %v1176_v61 = vpack.c.bf16 %v931_v53, %v931_v53  ;;  %v1928_v52 = vld [vmem:[#allocation7 + $0x38] sm:$0xff]  }
 0x40b   : > { %v1182_v58 = vsel %vm1180_vm3, %v1173_v17, 0  ;;  %v1228_v59 = vsel %vm1180_vm3, %v1174_v57, 0  ;;  %v1274_v55 = vsel %vm1180_vm3, %v1175_v60, 0  ;;  %v1320_v56 = vsel %vm1180_vm3, %v1176_v61, 0 }
 0x40c   : > { %1812 = vmatpush3.bf16.msra.mxu1 %v1182_v58  ;;  %1818 = vmatpush3.bf16.msra.mxu0 %v1228_v59 }
 0x40d   : > { %1823 = vmatprep.subr.bf16.mxu1 %v2114_v0  ;;  %1829 = vmatprep.subr.bf16.mxu0 %v2114_v0 }
 0x40f   : > { %1814 = vmatmul.mubr.msk.bf16.vlgmr.msra.gmra.mrb[12].mxu1 %vm940_vm2, %v1169_v62  ;;  %1820 = vmatmul.mubr.msk.bf16.vlgmr.msra.gmra.mrb[16].mxu0 %vm940_vm2, %v1170_v63 }
 0x410   : > { %1824 = vmatpush3.bf16.msra.mxu1 %v1274_v55  ;;  %1830 = vmatpush3.bf16.msra.mxu0 %v1320_v56 }
 0x411   : > { %1825 = vmatprep.mubr.msk.bf16.mxu1 %vm2115_vm0, %v2114_v0  ;;  %1831 = vmatprep.mubr.msk.bf16.mxu0 %vm2115_vm0, %v2114_v0 }
 0x412   : > { %1835 = vmatprep.subr.bf16.mxu1 %v2114_v0 }
 0x426   : > { %v1157_v3 = vpop.xlane.xlu1 %1156 }
 0x427   : > { %1941 = vrcp.f32 %v1157_v3  ;;  %v1160_v4 = vpop.xlane.xlu0 %1159 }
 0x428   : > { %1943 = vrcp.f32 %v1160_v4 }
 0x431   : > { %v1942_v5 = vpop.eup %1941 }
 0x432   : > { %v1944_v6 = vpop.eup %1943  ;;  %v1167_v7 = vmul.f32 %v1942_v5, %v2476_v1 }
 0x433   : > { %v1168_v8 = vmul.f32 %v1944_v6, %v2478_v2 }
 0x434   : > { %v1171_v9 = vpack.c.bf16 %v1167_v7, %v1167_v7 }
 0x435   : > { %v1172_v10 = vpack.c.bf16 %v1168_v8, %v1168_v8 }
 0x436   : > { %1826 = vmatmul.mubr.msk.bf16.vlgmr.msra.gmra.mrb[16].mxu1 %vm940_vm2, %v1171_v9 }
 0x437   : > { %1832 = vmatmul.mubr.msk.bf16.vlgmr.msra.gmra.mrb[20].mxu0 %vm940_vm2, %v1172_v10  ;;  %1839 = vmatprep.mubr.msk.bf16.mxu1 %vm2115_vm0, %v2114_v0  ;;  %v1518_v10 = vsub.s32 3, %v2370_v11 }
 0x438   : > { %1836 = vmatpush3.bf16.msra.mxu1 %v1927_v41 }
 0x439   : > { %1837 = vmatprep.subr.bf16.mxu1 %v2114_v0 }
 0x43c   : > { %1838 = vmatpush3.bf16.msra.mxu1 %v1928_v52 }
 0x4e2   : > { %v1218_v12 = vpop.f32.mrb[12].mxu1  ;;  %v1264_v14 = vpop.f32.mrb[16].mxu0 }
 0x4e3   : > { %v1815_v15 = vpop.f32.mrb[13].mxu1  ;;  %v1821_v16 = vpop.f32.mrb[17].mxu0 }
 0x4e4   : > { %v1221_v19 = vpop.f32.mrb[14].mxu1  ;;  %v1267_v20 = vpop.f32.mrb[18].mxu0 }
 0x4e5   : > { %v1816_v21 = vpop.f32.mrb[15].mxu1  ;;  %v1822_v22 = vpop.f32.mrb[19].mxu0 }
 0x509   : > { %v1310_v1 = vpop.f32.mrb[16].mxu1 }
 0x50a   : > { %v1362_v23 = vcombine.low %v1218_v12, %v1310_v1  ;;  %v1363_v2 = vcombine.high %v1218_v12, %v1310_v1  ;;  %v1356_v24 = vpop.f32.mrb[20].mxu0  ;;  %v1827_v25 = vpop.f32.mrb[17].mxu1  ;;  %v1519_v12 = vrot.slane %v2376_v13, %v1518_v10 }
 0x50b   : > { %v1378_v26 = vcombine.low %v1264_v14, %v1356_v24  ;;  %v1379_v27 = vcombine.high %v1264_v14, %v1356_v24  ;;  %v1833_v28 = vpop.f32.mrb[21].mxu0  ;;  %v1313_v29 = vpop.f32.mrb[18].mxu1 }
 0x50c   : > { %v1370_v30 = vrot.slane %v1362_v23, %v2400_v42  ;;  %v1377_v31 = vrot.slane %v1363_v2, %v2400_v42  ;;  %v1359_v32 = vpop.f32.mrb[22].mxu0  ;;  %v1828_v33 = vpop.f32.mrb[19].mxu1 }
 0x50d   : > { %v1386_v34 = vrot.slane %v1378_v26, %v2400_v42  ;;  %v1393_v35 = vrot.slane %v1379_v27, %v2400_v42  ;;  %v1834_v36 = vpop.f32.mrb[23].mxu0 }
 0x50f   : > { %v1394_v37 = vcombine.low %v1370_v30, %v1386_v34  ;;  %v1395_v38 = vcombine.high %v1370_v30, %v1386_v34  ;;  %v1410_v39 = vcombine.low %v1377_v31, %v1393_v35  ;;  %v1411_v40 = vcombine.high %v1377_v31, %v1393_v35 }
 0x511   : > { %v1402_v43 = vrot.slane %v1394_v37, %v2403_v49  ;;  %v1409_v44 = vrot.slane %v1395_v38, %v2403_v49  ;;  %v1418_v45 = vrot.slane %v1410_v39, %v2403_v49  ;;  %v1425_v46 = vrot.slane %v1411_v40, %v2403_v49 }
 0x513   : > { %v1430_v47 = vcombine.low %v1402_v43, %v1409_v44  ;;  %v1726_v48 = vcombine.high %v1402_v43, %v1409_v44  ;;  %v1446_v50 = vcombine.low %v1418_v45, %v1425_v46  ;;  %v1727_v51 = vcombine.high %v1418_v45, %v1425_v46 }
 0x515   : > { %v1437_v53 = vrot.slane %v1430_v47, %v2400_v42  ;;  %v1445_v54 = vrot.slane %v1726_v48, %v2400_v42  ;;  %v1453_v18 = vrot.slane %v1446_v50, %v2400_v42  ;;  %v1461_v17 = vrot.slane %v1727_v51, %v2400_v42 }
 0x517   : > { %v1463_v57 = vcombine.high %v1437_v53, %v1445_v54  ;;  %v1479_v58 = vcombine.high %v1453_v18, %v1461_v17  ;;  %v1462_v59 = vcombine.low %v1437_v53, %v1445_v54  ;;  %v1478_v60 = vcombine.low %v1453_v18, %v1461_v17 }
 0x519   : > { %v1477_v0 = vrot.slane %v1463_v57, %v2403_v49  ;;  %v1493_v61 = vrot.slane %v1479_v58, %v2403_v49  ;;  %v1470_v62 = vrot.slane %v1462_v59, %v2403_v49  ;;  %v1486_v63 = vrot.slane %v1478_v60, %v2403_v49 }
 0x51b   : > { %v1496_v55 = vcombine.low %v1477_v0, %v1493_v61  ;;  %v1495_v56 = vcombine.high %v1470_v62, %v1486_v63  ;;  %v1497_v3 = vcombine.high %v1477_v0, %v1493_v61  ;;  %v1494_v4 = vcombine.low %v1470_v62, %v1486_v63 }
 0x51d   : > { %1503 = vrot.lane.b32.xlu1 %v1496_v55, %s2122_s10  ;;  %1499 = vrot.lane.b32.xlu0 %v1495_v56, %s2123_s11 }
 0x521   : > { %1507 = vrot.lane.b32.xlu1 %v1497_v3, %s2124_s8 }
 0x58f   : > { %v1504_v42 = vpop.permute.xlu1 %1503  ;;  %v1500_v5 = vpop.permute.xlu0 %1499 }
 0x590   : > { %v1510_v6 = vsel %vm940_vm2, %v1494_v4, %v1500_v5 }
 0x591   : > { %v1512_v49 = vsel %vm1511_vm4, %v1510_v6, %v1504_v42 }
 0x593   : > { %v1508_v7 = vpop.permute.xlu1 %1507 }
 0x594   : > { %v1514_v8 = vsel %vm1513_vm5, %v1512_v49, %v1508_v7 }
 0x595   : > { %v1515_v9 = vpack.c.bf16 %v1514_v8, %v1514_v8 }
 0x597   : > { %1840 = vmatmul.mubr.msk.bf16.vlgmr.msra.gmra.mrb[20].mxu1 %vm340_vm1, %v1515_v9 }
 0x66a   : > { %v1569_v14 = vpop.f32.mrb[20].mxu1 }
 0x66b   : > { %v1570_v15 = vadd.f32 %v1569_v14, %v1519_v12  ;;  %v1841_v16 = vpop.f32.mrb[21].mxu1 }
 0x66c   : > { %v1572_v11 = vpop.f32.mrb[22].mxu1 }
 0x66d   : > { %v1842_v19 = vpop.f32.mrb[23].mxu1  ;;  %1575 = vst.msk [vmem:[%s266_s5] sm:$0xff] %vm340_vm1, %v1570_v15 }
 0x66e   : > { %2046 = shalt.err (!%p2043_p2)
}
 0x66f   : > { %s2047_s2 = scalar_lea.hbm %s2548_s20, 128  ;;  %s2051_s13 = scalar_lea.hbm %s2597_s4, 256 }
 0x670   : > { %p2048_p6 = scmp.ne.s32.totalorder %s2548_s20, %s2047_s2  ;;  %p2052_p12 = scmp.lt.u32.totalorder %s2548_s20, %s2597_s4 }
 0x671   : > { %p2053_p11 = scmp.lt.u32.totalorder %s2051_s13, %s2047_s2  ;;  %p2055_p10 = scmp.lt.u32.totalorder %s2047_s2, %s2548_s20 }
 0x672   : > { %p2049_p8 = pnand %p2048_p6, %p2619_p13 }
 0x673   : > { %p2054_p0 = por %p2053_p11, %p2052_p12 }
 0x674   : > { %p2050_p4 = pneg %p2049_p8 }
 0x675   : > { %p2056_p3 = por %p2055_p10, %p2054_p0 }
 0x677   : > { %p2057_p7 = pnand %p2056_p3, %p2050_p4 }
 0x679   : > { %2060 = shalt.err (!%p2057_p7)
}
 0x67a   : > { %1854 = dma.vmem_to_hbm [thread:$0]  (%p2619_p13), %s2550_s7, 128, %s2548_s20, %s1577_s19  }
 0x67b PF: > { %s1602_s10 = sand.u32 1, %s2095_s15   ;;  %p2620_p9 = scmp.ne.s32.totalorder %s2606_s22, 0 }
 0x67c   : > { %p2621_p1 = scmp.ge.s32.totalorder %s2107_s18, 2  ;;  %s1603_s11 = scalar_lea.sflag [#allocation4], %s1602_s10 }
 0x67e   : > { %p1868_p5 = pnand %p2621_p1, %p2620_p9 }
 0x680   : > { %2090 = dma.done.wait (!%p1868_p5), %s1603_s11, 128  }
 0x681   : > { %2092 = vsyncadd (!%p1868_p5), %s1603_s11, 4294967168  ;;  %p20_p2 = scmp.ge.s32.totalorder %s2207_s27, 4   ;;  %s2622_s15 = smov %s2099_s16 }
 0x682   : > { %s2623_s16 = smov %s2103_s17  ;;  %s2624_s17 = smov %s2241_s24 }
 0x683   : > { %s2625_s18 = smov %s2207_s27  ;;  %22 = sbr.rel (!%p20_p2) target bundleno = 10 (0xa), region = 98 }
 0x68a   :  { %1608 = vsyncpa [#allocation3], 1 }
 0x68b   :  { %1610 = vsyncpa [#allocation3 + $0x1], 1 }
 0x68c   :  { %1611 = vsyncpa [#allocation6], 1 }
 0x68d   :  { %1613 = vsyncpa [#allocation6 + $0x1], 1 }
 0x68e   :  { %1614 = vsyncpa [#allocation4], 1 }
 0x68f   :  { %1616 = vsyncpa [#allocation4 + $0x1], 1 }

</bundles_post_ra>
